<compile_context>
chip_gen: v6e
topology: v6e:2x2x1
jax: 0.10.0
libtpu: 0.0.40
codegen_flags: <defaults>
</compile_context>

<pallas_src>
import functools

import jax
import jax.numpy as jnp
from jax.experimental import pallas as pl
from jax.experimental.pallas import tpu as pltpu

BOARD_DIM = 64
MOVES_DIM = 5
NEG_SLOPE = 0.01          # nn.LeakyReLU default
DEFAULT_BLOCK_B = 2048    # batch rows per grid step (multiple of 8)


def _leaky(x):
    # max(x, 0.01*x) == LeakyReLU(0.01) for slope < 1 (single mul+max on VPU).
    return jnp.maximum(x, NEG_SLOPE * x)


def _round_up(x, m):
    return ((x + m - 1) // m) * m


# ---------------------------------------------------------------------------
# Kernel
# ---------------------------------------------------------------------------
def grandmaster_kernel(
    board_ref, moves_ref,
    w1f, b1f,          # fused layer 1 (board L1 | moves L1)
    w2f, b2f,          # fused layer 2 (board L2 | moves L2)
    w3f, b3f,          # fused layer 3 (board L3 | moves-part of output L1)
    ow1a, ob1,         # board-part of output L1
    ow2T, ob2,         # output L2
    out_ref,
    *, d3b,            # static split point (board_dim // 2)
):
    f32 = jnp.float32
    cdt = w1f.dtype

    def leaky(x):
        return jnp.maximum(x, NEG_SLOPE * x)

    def dot(x, w_ref):
        # MXU matmul in the weight compute dtype, f32 accumulation.
        return jnp.dot(x, w_ref[...], preferred_element_type=f32)

    # Single LHS for the block-diagonal layer-1 matmul.  Inputs stream from
    # HBM as f32 (no wrapper copy); one in-kernel cast to the compute dtype.
    xin = jnp.concatenate(
        [board_ref[...], moves_ref[...]], axis=1).astype(cdt)       # (tb, 69)

    # Fused layer 1: board L1 (/12 folded into w1f) | moves L1.
    a1 = leaky(dot(xin, w1f) + b1f[...]).astype(cdt)                # (tb, 148)
    # Fused layer 2: board L2 | moves L2.
    a2 = leaky(dot(a1, w2f) + b2f[...]).astype(cdt)                 # (tb, 74)

    # Fused layer 3: board L3 | (moves branch output @ ow1b).
    z3 = dot(a2, w3f) + b3f[...]                                    # (tb, 53) f32
    x3 = leaky(z3[:, :d3b]).astype(cdt)                             # (tb, 32)
    part = z3[:, d3b:]                                              # (tb, 21) f32, no activation

    # Output layer 1: concat(x3, x2) @ ow1 + ob1 done as split matmul.
    h = leaky(dot(x3, ow1a) + part + ob1[...]).astype(cdt)          # (tb, 21)
    # Output layer 2.
    logits = leaky(dot(h, ow2T) + ob2[...])                         # (tb, 5) f32

    # Softmax over dim=1; reciprocal goes to the (otherwise idle) EUP slot.
    m = jnp.max(logits, axis=1, keepdims=True)
    e = jnp.exp(logits - m)
    s = jnp.sum(e, axis=1, keepdims=True)
    out_ref[...] = (e * pl.reciprocal(s, approx=True)).astype(out_ref.dtype)


# ---------------------------------------------------------------------------
# Parameter handling
# ---------------------------------------------------------------------------
def init_params(key, board_dim=BOARD_DIM, moves_dim=MOVES_DIM):
    """Deterministic synthetic parameters (PyTorch Linear shapes: W is [out, in])."""
    dims = [
        # board_net
        ("bw1", (board_dim * 2, board_dim)), ("bb1", (board_dim * 2,)),
        ("bw2", (board_dim, board_dim * 2)), ("bb2", (board_dim,)),
        ("bw3", (board_dim // 2, board_dim)), ("bb3", (board_dim // 2,)),
        # moves_net
        ("mw1", (moves_dim * 4, moves_dim)), ("mb1", (moves_dim * 4,)),
        ("mw2", (moves_dim * 2, moves_dim * 4)), ("mb2", (moves_dim * 2,)),
        # output_net
        ("ow1", ((board_dim // 2 + moves_dim * 2) // 2,
                 board_dim // 2 + moves_dim * 2)),
        ("ob1", ((board_dim // 2 + moves_dim * 2) // 2,)),
        ("ow2", (moves_dim, (board_dim // 2 + moves_dim * 2) // 2)),
        ("ob2", (moves_dim,)),
    ]
    params = {}
    keys = jax.random.split(key, len(dims))
    for k, (name, shape) in zip(keys, dims):
        fan_in = shape[-1] if len(shape) == 2 else shape[0]
        scale = 1.0 / jnp.sqrt(jnp.float32(fan_in))
        params[name] = (jax.random.uniform(k, shape, jnp.float32, -1.0, 1.0)
                        * scale)
    return params


def prepare_params(params, board_dim=BOARD_DIM, moves_dim=MOVES_DIM,
                   compute_dtype=jnp.bfloat16):
    """One-time weight prep (do NOT call per forward).

    Builds the block-diagonal fused weights (transposed to [in, out]), folds
    the /12 board normalization into layer 1, splits the output-layer-1
    weight so the concat becomes a split matmul, casts matmul weights to
    compute_dtype and keeps all biases f32."""
    cdt = compute_dtype
    f32 = jnp.float32
    d1b, d1m = 2 * board_dim, 4 * moves_dim      # 128, 20
    d2b, d2m = board_dim, 2 * moves_dim          # 64, 10
    d3b = board_dim // 2                         # 32
    oh = (d3b + d2m) // 2                        # 21

    # Layer 1: [board(64)|moves(5)] -> [board_h(128)|moves_h(20)]
    w1f = jnp.zeros((board_dim + moves_dim, d1b + d1m), f32)
    w1f = w1f.at[:board_dim, :d1b].set((params["bw1"] / 12.0).T)   # fold /12
    w1f = w1f.at[board_dim:, d1b:].set(params["mw1"].T)
    b1f = jnp.concatenate([params["bb1"], params["mb1"]]).reshape(1, -1)

    # Layer 2: (148) -> [board(64)|moves(10)]
    w2f = jnp.zeros((d1b + d1m, d2b + d2m), f32)
    w2f = w2f.at[:d1b, :d2b].set(params["bw2"].T)
    w2f = w2f.at[d1b:, d2b:].set(params["mw2"].T)
    b2f = jnp.concatenate([params["bb2"], params["mb2"]]).reshape(1, -1)

    # Layer 3 fused with the moves-half of output layer 1:
    # (74) -> [board_L3(32) | moves @ ow1b (21)].  The ow1b half gets zero
    # bias and no activation here; ob1 is added after the ow1a dot.
    ow1 = params["ow1"]                                   # [21, 42]
    w3f = jnp.zeros((d2b + d2m, d3b + oh), f32)
    w3f = w3f.at[:d2b, :d3b].set(params["bw3"].T)
    w3f = w3f.at[d2b:, d3b:].set(ow1[:, d3b:].T)
    b3f = jnp.concatenate([params["bb3"], jnp.zeros((oh,), f32)]).reshape(1, -1)

    ow1a = ow1[:, :d3b].T                                 # [32, 21]
    ob1 = params["ob1"].reshape(1, -1)
    ow2T = params["ow2"].T                                # [21, 5]
    ob2 = params["ob2"].reshape(1, -1)

    return (w1f.astype(cdt), b1f.astype(f32),
            w2f.astype(cdt), b2f.astype(f32),
            w3f.astype(cdt), b3f.astype(f32),
            ow1a.astype(cdt), ob1.astype(f32),
            ow2T.astype(cdt), ob2.astype(f32))


# ---------------------------------------------------------------------------
# Wrapper
# ---------------------------------------------------------------------------
def _vmem_limit_bytes(tb, prepared):
    weight_bytes = sum(int(a.size) * a.dtype.itemsize for a in prepared)
    stream = 2 * 3 * tb * 128 * 4                       # double-buffered I/O blocks (lane-padded)
    interm = 2 * tb * 4 * (256 + 256 + 128 + 128 + 128)  # generous temporaries
    est = 2 * weight_bytes + stream + interm + (2 << 20)
    # >= 32 MiB so the scoped default never binds; capped for portability
    # (v7x has 64 MiB physical VMEM; keep block_b <= 2048 there).
    return int(min(max(est, 32 << 20), 96 << 20))


def grandmaster_forward(board_vector, moves_vector, prepared,
                        *, block_b=DEFAULT_BLOCK_B):
    B, board_dim = board_vector.shape
    moves_dim = moves_vector.shape[1]
    d3b = prepared[6].shape[0]                 # ow1a rows == board_dim // 2

    # Batch block: multiple of 8 (f32 sublanes) and small enough that the
    # grid has >= 2 steps whenever possible (so "parallel" spans both v7x
    # TensorCores).  No host-side pad: the ragged tail is masked by Pallas.
    tb = min(_round_up(block_b, 8), _round_up(pl.cdiv(B, 2), 8))
    tb = max(tb, 8)
    grid = (pl.cdiv(B, tb),)

    def act_spec(d):
        return pl.BlockSpec((tb, d), lambda i: (i, 0))

    # Constant index_map -> each weight/bias is DMA'd once and stays resident.
    const_specs = [pl.BlockSpec(a.shape, lambda i: (0, 0)) for a in prepared]

    kernel = functools.partial(grandmaster_kernel, d3b=d3b)

    out = pl.pallas_call(
        kernel,
        out_shape=jax.ShapeDtypeStruct((B, moves_dim), jnp.float32),
        grid=grid,
        in_specs=[act_spec(board_dim), act_spec(moves_dim)] + const_specs,
        out_specs=pl.BlockSpec((tb, moves_dim), lambda i: (i, 0)),
        compiler_params=pltpu.CompilerParams(
            dimension_semantics=("parallel",),          # megacore sharding
            vmem_limit_bytes=_vmem_limit_bytes(tb, prepared),
        ),
    )(board_vector, moves_vector, *prepared)
    return out


# ---------------------------------------------------------------------------
# Pure-JAX reference (mirrors the PyTorch module exactly)
# ---------------------------------------------------------------------------
def reference_forward(board_vector, moves_vector, params):
    def lin(x, w, b):
        return x @ w.T + b
    x1 = board_vector / 12.0
    x1 = _leaky(lin(x1, params["bw1"], params["bb1"]))
    x1 = _leaky(lin(x1, params["bw2"], params["bb2"]))
    x1 = _leaky(lin(x1, params["bw3"], params["bb3"]))
    x2 = _leaky(lin(moves_vector, params["mw1"], params["mb1"]))
    x2 = _leaky(lin(x2, params["mw2"], params["mb2"]))
    x = jnp.concatenate([x1, x2], axis=1)
    x = _leaky(lin(x, params["ow1"], params["ob1"]))
    x = _leaky(lin(x, params["ow2"], params["ob2"]))
    return jax.nn.softmax(x, axis=1)


if __name__ == "__main__":
    key = jax.random.PRNGKey(0)
    k_p, k_b, k_m = jax.random.split(key, 3)

    B = 19  # not a multiple of 8: exercises the ragged tail + multi-step grid
    params = init_params(k_p)
    board_vector = jax.random.uniform(k_b, (B, BOARD_DIM), jnp.float32,
                                      -6.0, 12.0)
    moves_vector = jax.random.uniform(k_m, (B, MOVES_DIM), jnp.float32,
                                      0.0, 1.0)

    ref = reference_forward(board_vector, moves_vector, params)

    # --- f32 matmul path; block_b=8 -> tb=8, 3 grid steps, ragged last block.
    prep_f32 = prepare_params(params, compute_dtype=jnp.float32)
    out_f32 = jax.block_until_ready(
        grandmaster_forward(board_vector, moves_vector, prep_f32, block_b=8))
    assert out_f32.shape == (B, MOVES_DIM)
    assert jnp.allclose(out_f32, ref, atol=1e-3, rtol=1e-3), "f32 mismatch"
    assert jnp.allclose(jnp.sum(out_f32, axis=1), 1.0, atol=1e-2)

    # --- bf16 MXU path; default block -> tb=16, 2 grid steps (both TCs).
    prep_bf16 = prepare_params(params, compute_dtype=jnp.bfloat16)
    out_bf16 = jax.block_until_ready(
        grandmaster_forward(board_vector, moves_vector, prep_bf16))
    assert out_bf16.shape == (B, MOVES_DIM)
    assert jnp.allclose(out_bf16, ref, atol=5e-2, rtol=5e-2), "bf16 mismatch"
    assert jnp.allclose(jnp.sum(out_bf16, axis=1), 1.0, atol=1e-2)

    print("KERNEL_OK")
</pallas_src>

<mosaic_0001>
module attributes {stable_mosaic.version = 11 : i64} {
  func.func @grandmaster_kernel(%arg0: i32, %arg1: memref<8x64xf32, #tpu.memory_space<vmem>>, %arg2: memref<8x5xf32, #tpu.memory_space<vmem>>, %arg3: memref<69x148xf32, #tpu.memory_space<vmem>>, %arg4: memref<1x148xf32, #tpu.memory_space<vmem>>, %arg5: memref<148x74xf32, #tpu.memory_space<vmem>>, %arg6: memref<1x74xf32, #tpu.memory_space<vmem>>, %arg7: memref<74x53xf32, #tpu.memory_space<vmem>>, %arg8: memref<1x53xf32, #tpu.memory_space<vmem>>, %arg9: memref<32x21xf32, #tpu.memory_space<vmem>>, %arg10: memref<1x21xf32, #tpu.memory_space<vmem>>, %arg11: memref<21x5xf32, #tpu.memory_space<vmem>>, %arg12: memref<1x5xf32, #tpu.memory_space<vmem>>, %arg13: memref<8x5xf32, #tpu.memory_space<vmem>>) attributes {dimension_semantics = [#tpu.dimension_semantics<parallel>], iteration_bounds = array<i64: 3>, scalar_prefetch = 0 : i64, scratch_operands = 0 : i64, tpu.core_type = #tpu.core_type<tc>, window_params = [{transform_indices = @transform_0, window_bounds = array<i64: 8, 64>}, {transform_indices = @transform_1, window_bounds = array<i64: 8, 5>}, {pipeline_mode = #tpu.pipeline_mode<synchronous>, transform_indices = @transform_2, window_bounds = array<i64: 69, 148>}, {pipeline_mode = #tpu.pipeline_mode<synchronous>, transform_indices = @transform_3, window_bounds = array<i64: 1, 148>}, {pipeline_mode = #tpu.pipeline_mode<synchronous>, transform_indices = @transform_4, window_bounds = array<i64: 148, 74>}, {pipeline_mode = #tpu.pipeline_mode<synchronous>, transform_indices = @transform_5, window_bounds = array<i64: 1, 74>}, {pipeline_mode = #tpu.pipeline_mode<synchronous>, transform_indices = @transform_6, window_bounds = array<i64: 74, 53>}, {pipeline_mode = #tpu.pipeline_mode<synchronous>, transform_indices = @transform_7, window_bounds = array<i64: 1, 53>}, {pipeline_mode = #tpu.pipeline_mode<synchronous>, transform_indices = @transform_8, window_bounds = array<i64: 32, 21>}, {pipeline_mode = #tpu.pipeline_mode<synchronous>, transform_indices = @transform_9, window_bounds = array<i64: 1, 21>}, {pipeline_mode = #tpu.pipeline_mode<synchronous>, transform_indices = @transform_10, window_bounds = array<i64: 21, 5>}, {pipeline_mode = #tpu.pipeline_mode<synchronous>, transform_indices = @transform_11, window_bounds = array<i64: 1, 5>}, {transform_indices = @transform_12, window_bounds = array<i64: 8, 5>}]} {
    %c0 = arith.constant 0 : index
    %c0_0 = arith.constant 0 : index
    %0 = vector.load %arg1[%c0, %c0_0] : memref<8x64xf32, #tpu.memory_space<vmem>>, vector<8x64xf32>
    %c0_1 = arith.constant 0 : index
    %c0_2 = arith.constant 0 : index
    %1 = vector.load %arg2[%c0_1, %c0_2] : memref<8x5xf32, #tpu.memory_space<vmem>>, vector<8x5xf32>
    %2 = tpu.concatenate %0, %1 in 1 : vector<8x64xf32>, vector<8x5xf32> -> vector<8x69xf32>
    %c0_3 = arith.constant 0 : index
    %c0_4 = arith.constant 0 : index
    %3 = vector.load %arg3[%c0_3, %c0_4] : memref<69x148xf32, #tpu.memory_space<vmem>>, vector<69x148xf32>
    %cst = arith.constant dense<0.000000e+00> : vector<8x148xf32>
    %4 = tpu.matmul %2, %3, %cst {dimension_numbers = #tpu.dot_dimension_numbers<[1], [0], [0], [1], [0, 0, 1, 1], [], []>} : vector<8x69xf32>, vector<69x148xf32>, vector<8x148xf32> -> vector<8x148xf32>
    %c0_5 = arith.constant 0 : index
    %c0_6 = arith.constant 0 : index
    %5 = vector.load %arg4[%c0_5, %c0_6] : memref<1x148xf32, #tpu.memory_space<vmem>>, vector<1x148xf32>
    %6 = vector.broadcast %5 : vector<1x148xf32> to vector<8x148xf32>
    %7 = arith.addf %4, %6 : vector<8x148xf32>
    %cst_7 = arith.constant 0.00999999977 : f32
    %8 = vector.broadcast %cst_7 : f32 to vector<8x148xf32>
    %9 = arith.mulf %8, %7 : vector<8x148xf32>
    %10 = arith.maximumf %7, %9 : vector<8x148xf32>
    %c0_8 = arith.constant 0 : index
    %c0_9 = arith.constant 0 : index
    %11 = vector.load %arg5[%c0_8, %c0_9] : memref<148x74xf32, #tpu.memory_space<vmem>>, vector<148x74xf32>
    %cst_10 = arith.constant dense<0.000000e+00> : vector<8x74xf32>
    %12 = tpu.matmul %10, %11, %cst_10 {dimension_numbers = #tpu.dot_dimension_numbers<[1], [0], [0], [1], [0, 0, 1, 1], [], []>} : vector<8x148xf32>, vector<148x74xf32>, vector<8x74xf32> -> vector<8x74xf32>
    %c0_11 = arith.constant 0 : index
    %c0_12 = arith.constant 0 : index
    %13 = vector.load %arg6[%c0_11, %c0_12] : memref<1x74xf32, #tpu.memory_space<vmem>>, vector<1x74xf32>
    %14 = vector.broadcast %13 : vector<1x74xf32> to vector<8x74xf32>
    %15 = arith.addf %12, %14 : vector<8x74xf32>
    %cst_13 = arith.constant 0.00999999977 : f32
    %16 = vector.broadcast %cst_13 : f32 to vector<8x74xf32>
    %17 = arith.mulf %16, %15 : vector<8x74xf32>
    %18 = arith.maximumf %15, %17 : vector<8x74xf32>
    %c0_14 = arith.constant 0 : index
    %c0_15 = arith.constant 0 : index
    %19 = vector.load %arg7[%c0_14, %c0_15] : memref<74x53xf32, #tpu.memory_space<vmem>>, vector<74x53xf32>
    %cst_16 = arith.constant dense<0.000000e+00> : vector<8x53xf32>
    %20 = tpu.matmul %18, %19, %cst_16 {dimension_numbers = #tpu.dot_dimension_numbers<[1], [0], [0], [1], [0, 0, 1, 1], [], []>} : vector<8x74xf32>, vector<74x53xf32>, vector<8x53xf32> -> vector<8x53xf32>
    %c0_17 = arith.constant 0 : index
    %c0_18 = arith.constant 0 : index
    %21 = vector.load %arg8[%c0_17, %c0_18] : memref<1x53xf32, #tpu.memory_space<vmem>>, vector<1x53xf32>
    %22 = vector.broadcast %21 : vector<1x53xf32> to vector<8x53xf32>
    %23 = arith.addf %20, %22 : vector<8x53xf32>
    %24 = vector.extract_strided_slice %23 {offsets = [0, 0], sizes = [8, 32], strides = [1, 1]} : vector<8x53xf32> to vector<8x32xf32>
    %cst_19 = arith.constant 0.00999999977 : f32
    %25 = vector.broadcast %cst_19 : f32 to vector<8x32xf32>
    %26 = arith.mulf %25, %24 : vector<8x32xf32>
    %27 = arith.maximumf %24, %26 : vector<8x32xf32>
    %28 = vector.extract_strided_slice %23 {offsets = [0, 32], sizes = [8, 21], strides = [1, 1]} : vector<8x53xf32> to vector<8x21xf32>
    %c0_20 = arith.constant 0 : index
    %c0_21 = arith.constant 0 : index
    %29 = vector.load %arg9[%c0_20, %c0_21] : memref<32x21xf32, #tpu.memory_space<vmem>>, vector<32x21xf32>
    %cst_22 = arith.constant dense<0.000000e+00> : vector<8x21xf32>
    %30 = tpu.matmul %27, %29, %cst_22 {dimension_numbers = #tpu.dot_dimension_numbers<[1], [0], [0], [1], [0, 0, 1, 1], [], []>} : vector<8x32xf32>, vector<32x21xf32>, vector<8x21xf32> -> vector<8x21xf32>
    %31 = arith.addf %30, %28 : vector<8x21xf32>
    %c0_23 = arith.constant 0 : index
    %c0_24 = arith.constant 0 : index
    %32 = vector.load %arg10[%c0_23, %c0_24] : memref<1x21xf32, #tpu.memory_space<vmem>>, vector<1x21xf32>
    %33 = vector.broadcast %32 : vector<1x21xf32> to vector<8x21xf32>
    %34 = arith.addf %31, %33 : vector<8x21xf32>
    %cst_25 = arith.constant 0.00999999977 : f32
    %35 = vector.broadcast %cst_25 : f32 to vector<8x21xf32>
    %36 = arith.mulf %35, %34 : vector<8x21xf32>
    %37 = arith.maximumf %34, %36 : vector<8x21xf32>
    %c0_26 = arith.constant 0 : index
    %c0_27 = arith.constant 0 : index
    %38 = vector.load %arg11[%c0_26, %c0_27] : memref<21x5xf32, #tpu.memory_space<vmem>>, vector<21x5xf32>
    %cst_28 = arith.constant dense<0.000000e+00> : vector<8x5xf32>
    %39 = tpu.matmul %37, %38, %cst_28 {dimension_numbers = #tpu.dot_dimension_numbers<[1], [0], [0], [1], [0, 0, 1, 1], [], []>} : vector<8x21xf32>, vector<21x5xf32>, vector<8x5xf32> -> vector<8x5xf32>
    %c0_29 = arith.constant 0 : index
    %c0_30 = arith.constant 0 : index
    %40 = vector.load %arg12[%c0_29, %c0_30] : memref<1x5xf32, #tpu.memory_space<vmem>>, vector<1x5xf32>
    %41 = vector.broadcast %40 : vector<1x5xf32> to vector<8x5xf32>
    %42 = arith.addf %39, %41 : vector<8x5xf32>
    %cst_31 = arith.constant 0.00999999977 : f32
    %43 = vector.broadcast %cst_31 : f32 to vector<8x5xf32>
    %44 = arith.mulf %43, %42 : vector<8x5xf32>
    %45 = arith.maximumf %42, %44 : vector<8x5xf32>
    %cst_32 = arith.constant dense<0xFF800000> : vector<8xf32>
    %46 = vector.multi_reduction <maximumf>, %45, %cst_32 [1] : vector<8x5xf32> to vector<8xf32>
    %47 = vector.shape_cast %46 : vector<8xf32> to vector<8x1xf32>
    %48 = vector.broadcast %47 : vector<8x1xf32> to vector<8x5xf32>
    %49 = arith.subf %45, %48 : vector<8x5xf32>
    %50 = math.exp %49 : vector<8x5xf32>
    %cst_33 = arith.constant dense<0.000000e+00> : vector<8xf32>
    %51 = vector.multi_reduction <add>, %50, %cst_33 [1] : vector<8x5xf32> to vector<8xf32>
    %52 = vector.shape_cast %51 : vector<8xf32> to vector<8x1xf32>
    %53 = tpu.reciprocal %52 {approx = true} : vector<8x1xf32> -> vector<8x1xf32>
    %54 = vector.broadcast %53 : vector<8x1xf32> to vector<8x5xf32>
    %55 = arith.mulf %50, %54 : vector<8x5xf32>
    %c0_34 = arith.constant 0 : index
    %c0_35 = arith.constant 0 : index
    %56 = vector.load %arg13[%c0_34, %c0_35] : memref<8x5xf32, #tpu.memory_space<vmem>>, vector<8x5xf32>
    tpu.vector_store %arg13[%c0_34, %c0_35], %55 {strides = array<i32>} : memref<8x5xf32, #tpu.memory_space<vmem>>, vector<8x5xf32>,
    return
  }
  func.func @transform_0(%arg0: i32) -> (i32, i32) {
    %c0_i32 = arith.constant 0 : i32
    %c0_i32_0 = arith.constant 0 : i32
    return %arg0, %c0_i32 : i32, i32
  }
  func.func @transform_1(%arg0: i32) -> (i32, i32) {
    %c0_i32 = arith.constant 0 : i32
    %c0_i32_0 = arith.constant 0 : i32
    return %arg0, %c0_i32 : i32, i32
  }
  func.func @transform_2(%arg0: i32) -> (i32, i32) {
    %c0_i32 = arith.constant 0 : i32
    %c0_i32_0 = arith.constant 0 : i32
    %c0_i32_1 = arith.constant 0 : i32
    return %c0_i32, %c0_i32_0 : i32, i32
  }
  func.func @transform_3(%arg0: i32) -> (i32, i32) {
    %c0_i32 = arith.constant 0 : i32
    %c0_i32_0 = arith.constant 0 : i32
    %c0_i32_1 = arith.constant 0 : i32
    return %c0_i32, %c0_i32_0 : i32, i32
  }
  func.func @transform_4(%arg0: i32) -> (i32, i32) {
    %c0_i32 = arith.constant 0 : i32
    %c0_i32_0 = arith.constant 0 : i32
    %c0_i32_1 = arith.constant 0 : i32
    return %c0_i32, %c0_i32_0 : i32, i32
  }
  func.func @transform_5(%arg0: i32) -> (i32, i32) {
    %c0_i32 = arith.constant 0 : i32
    %c0_i32_0 = arith.constant 0 : i32
    %c0_i32_1 = arith.constant 0 : i32
    return %c0_i32, %c0_i32_0 : i32, i32
  }
  func.func @transform_6(%arg0: i32) -> (i32, i32) {
    %c0_i32 = arith.constant 0 : i32
    %c0_i32_0 = arith.constant 0 : i32
    %c0_i32_1 = arith.constant 0 : i32
    return %c0_i32, %c0_i32_0 : i32, i32
  }
  func.func @transform_7(%arg0: i32) -> (i32, i32) {
    %c0_i32 = arith.constant 0 : i32
    %c0_i32_0 = arith.constant 0 : i32
    %c0_i32_1 = arith.constant 0 : i32
    return %c0_i32, %c0_i32_0 : i32, i32
  }
  func.func @transform_8(%arg0: i32) -> (i32, i32) {
    %c0_i32 = arith.constant 0 : i32
    %c0_i32_0 = arith.constant 0 : i32
    %c0_i32_1 = arith.constant 0 : i32
    return %c0_i32, %c0_i32_0 : i32, i32
  }
  func.func @transform_9(%arg0: i32) -> (i32, i32) {
    %c0_i32 = arith.constant 0 : i32
    %c0_i32_0 = arith.constant 0 : i32
    %c0_i32_1 = arith.constant 0 : i32
    return %c0_i32, %c0_i32_0 : i32, i32
  }
  func.func @transform_10(%arg0: i32) -> (i32, i32) {
    %c0_i32 = arith.constant 0 : i32
    %c0_i32_0 = arith.constant 0 : i32
    %c0_i32_1 = arith.constant 0 : i32
    return %c0_i32, %c0_i32_0 : i32, i32
  }
  func.func @transform_11(%arg0: i32) -> (i32, i32) {
    %c0_i32 = arith.constant 0 : i32
    %c0_i32_0 = arith.constant 0 : i32
    %c0_i32_1 = arith.constant 0 : i32
    return %c0_i32, %c0_i32_0 : i32, i32
  }
  func.func @transform_12(%arg0: i32) -> (i32, i32) {
    %c0_i32 = arith.constant 0 : i32
    %c0_i32_0 = arith.constant 0 : i32
    return %arg0, %c0_i32 : i32, i32
  }
}

</mosaic_0001>

<bundles_post_ra>
// kernel: tpu_custom_call.1
= control target key start
LH: loop header
LB: loop body
LE: loop exit
PB: predicated region body
PF: predicated region fallthrough
CT: control target
= control target key end

     0   :  { %17 = vsyncpa [#allocation3], 0  ;;  %s1642_s0 = inlined_call_operand.vmem [shape: f32[19,64], index: 0, kind: input, shape index: {}]   ;;  %s1643_s1 = inlined_call_operand.vmem [shape: f32[19,5], index: 1, kind: input, shape index: {}]   ;;  %s1644_s2 = inlined_call_operand.hbm [shape: f32[69,148], index: 2, kind: input, shape index: {}]   ;;  %s1645_s3 = inlined_call_operand.vmem [shape: f32[1,148], index: 3, kind: input, shape index: {}]   ;;  %s1646_s4 = inlined_call_operand.vmem [shape: f32[148,74], index: 4, kind: input, shape index: {}]   ;;  %s1647_s5 = inlined_call_operand.hbm [shape: f32[1,74], index: 5, kind: input, shape index: {}]   ;;  %s1648_s6 = inlined_call_operand.vmem [shape: f32[74,53], index: 6, kind: input, shape index: {}]   ;;  %s1649_s7 = inlined_call_operand.hbm [shape: f32[1,53], index: 7, kind: input, shape index: {}]   ;;  %s1650_s8 = inlined_call_operand.vmem [shape: f32[32,21], index: 8, kind: input, shape index: {}]   ;;  %s1651_s9 = inlined_call_operand.vmem [shape: f32[1,21], index: 9, kind: input, shape index: {}]   ;;  %s1652_s10 = inlined_call_operand.vmem [shape: f32[21,5], index: 10, kind: input, shape index: {}]   ;;  %s1653_s11 = inlined_call_operand.vmem [shape: f32[1,5], index: 11, kind: input, shape index: {}]   ;;  %s1654_s12 = inlined_call_operand.vmem [shape: f32[19,5], index: 12, kind: output, shape index: {}]  }
   0x1   :  { %18 = vsyncpa [#allocation5], 0  ;;  %s1393_s21 = smov 0  }
   0x2 LB: > { %s1319_s22 = smov [#allocation4]   ;;  %s1399_s24 = sadd.s32 4294967295, %s1317_s21   ;;  %s1317_s21 = sphi %s1393_s21, %s24_s21  }
   0x3   : > { %s349_s23 = sshll.u32 %s1319_s22, 4  ;;  %p1085_p0 = scmp.ge.s32.totalorder %s1317_s21, 1  ;;  %s350_s23 = int_to_ptr.vmem [resolvable:$true] %s349_s23 }
   0x4   : > { %p317_p1 = scmp.lt.s32.totalorder %s1317_s21, 4  ;;  %p1655_p2 = scmp.eq.s32.totalorder %s1399_s24, 0 }
   0x5   : > { %s1320_s26 = smov [#allocation2]   ;;  %s1321_s29 = smov [#allocation6]  }
   0x6   : > { %p1404_p3 = pnand %p1085_p0, %p317_p1  ;;  %s329_s27 = sshll.u32 %s1320_s26, 4  ;;  %s330_s27 = int_to_ptr.vmem [resolvable:$true] %s329_s27 }
   0x7   : > { %s363_s30 = sshll.u32 %s1321_s29, 4  ;;  %s1236_s13 = scalar_lea.vmem %s350_s23, 16  ;;  %s1416_s30 = int_to_ptr.vmem [resolvable:$true] %s363_s30 }
   0x8   : > { %s1657_s25 = scalar_select %p1404_p3, 1, 0 }
   0x9   : > { %p1188_p4 = pneg %p1404_p3  ;;  %p1237_p7 = scmp.ne.s32.totalorder %s350_s23, %s1236_s13 }
   0xa   : > { %s1243_s14 = scalar_lea.vmem %s350_s23, 32  ;;  %p1244_p10 = scmp.lt.s32.totalorder %s350_s23, %s350_s23 }
   0xb   : > { %p1412_p5 = pnand %p1655_p2, %p1188_p4  ;;  %p1245_p11 = scmp.lt.s32.totalorder %s1243_s14, %s1236_s13 }
   0xd   : > { %p1227_p6 = pneg %p1412_p5  ;;  %p1246_p12 = por %p1245_p11, %p1244_p10 }
   0xf   : > { %p1239_p8 = pnand %p1237_p7, %p1227_p6 }
  0x11   : > { %p1240_p9 = pneg %p1239_p8 }
  0x13   : > { %p1247_p13 = pnand %p1246_p12, %p1240_p9 }
  0x15   : > { %1250 = shalt.err (!%p1247_p13)
}
  0x16   : > { %1194 = dma.hbm_to_vmem [thread:$0]  (!%p1412_p5), %s1647_s5, 16, %s350_s23, [#allocation5]  }
  0x17   : > { %s1262_s17 = scalar_lea.vmem %s330_s27, 2304  ;;  %p1270_p7 = scmp.lt.s32.totalorder %s330_s27, %s330_s27 }
  0x18   : > { %p1263_p0 = scmp.ne.s32.totalorder %s330_s27, %s1262_s17  ;;  %p1271_p8 = scmp.lt.s32.totalorder %s1262_s17, %s1262_s17 }
  0x1a   : > { %p1265_p1 = pnand %p1263_p0, %p1227_p6  ;;  %p1272_p2 = por %p1271_p8, %p1270_p7 }
  0x1c   : > { %p1266_p4 = pneg %p1265_p1 }
  0x1e   : > { %p1273_p3 = pnand %p1272_p2, %p1266_p4 }
  0x20   : > { %1276 = shalt.err (!%p1273_p3)
}
  0x21   : > { %s1322_s18 = smov 256   ;;  %s1323_s19 = smov 16  }
  0x22   : > { %1191 = dma.hbm_to_vmem [thread:$0]  (!%p1412_p5), %s1644_s2, 2304, %s330_s27, [#allocation3], %s1322_s18, %s1322_s18, %s1323_s19  }
  0x23   : > { %s1288_s23 = scalar_lea.vmem %s1416_s30, 16  ;;  %s1295_s26 = scalar_lea.vmem %s1416_s30, 32 }
  0x24   : > { %p1289_p9 = scmp.ne.s32.totalorder %s1416_s30, %s1288_s23  ;;  %p1296_p3 = scmp.lt.s32.totalorder %s1416_s30, %s1416_s30 }
  0x25   : > { %p1297_p11 = scmp.lt.s32.totalorder %s1295_s26, %s1288_s23 }
  0x26   : > { %p1291_p10 = pnand %p1289_p9, %p1227_p6 }
  0x27   : > { %p1298_p12 = por %p1297_p11, %p1296_p3 }
  0x28   : > { %p1292_p2 = pneg %p1291_p10 }
  0x2a   : > { %p1299_p13 = pnand %p1298_p12, %p1292_p2 }
  0x2c   : > { %1302 = shalt.err (!%p1299_p13)
}
  0x2d   : > { %1197 = dma.hbm_to_vmem [thread:$0]  (!%p1412_p5), %s1649_s7, 16, %s1416_s30, [#allocation5]  }
  0x2e   : > { %p1659_p0 = scmp.ne.s32.totalorder %s1657_s25, 0 }
  0x2f   : > { %p1660_p6 = scmp.eq.s32.totalorder (!%p1659_p0), %s1399_s24, 0 }
  0x30   : > { %402 = sbr.rel (%p1659_p0) target bundleno = 1493 (0x5d5), region = 68 }
  0x35   : > { %1308 = dma.done.wait (%p1660_p6), [#allocation3], 2304   ;;  %p1661_p1 = pmov %p1660_p6 }
  0x37   : > { %1310 = vsyncadd (%p1661_p1), [#allocation3], 4294964992  ;;  %p1662_p4 = pmov %p1661_p1 }
  0x38   : > { %p1663_p7 = pmov %p1661_p1 }
  0x39   : > { %1312 = dma.done.wait (%p1662_p4), [#allocation5], 32  }
  0x3a   : > { %1314 = vsyncadd (%p1663_p7), [#allocation5], 4294967264  ;;  %p454_p8 = scmp.lt.s32.totalorder %s1399_s24, 2  ;;  %v1324_v0 = vmov 0.0   ;;  %vm508_vm0 = vcmask 1044480   ;;  %s1325_s14 = smov 64   ;;  %v494_v48 = vlaneseq }
  0x3b   : > { %579 = vmatprep.mubr.f32.mxu0 %v1324_v0  ;;  %624 = vmatprep.subr.mxu1 %v1324_v0  ;;  %v491_v2 = vld [vmem:[#allocation2 + $0x88] sm:$0x1f]  ;;  %v490_v3 = vld [vmem:[#allocation2 + $0x80] sm:$0x1f]  ;;  %v489_v4 = vld [vmem:[#allocation2 + $0x78] sm:$0xff]  ;;  %vm472_vm1 = vcmask 523264  }
  0x3c   : > { %s1665_s24 = smov (!%p454_p8, %s1399_s24), 2  ;;  %1097 = vmatprep.subr.msk.mxu0 %vm508_vm0, %v491_v2  ;;  %v488_v5 = vld [vmem:[#allocation2 + $0x70] sm:$0xff]  ;;  %v487_v6 = vld [vmem:[#allocation2 + $0x68] sm:$0xff]  ;;  %v486_v7 = vld [vmem:[#allocation2 + $0x60] sm:$0xff]  ;;  %vm504_vm2 = vcmask 564224   ;;  %vm620_vm3 = vcmask 1043456  }
  0x3d   : > { %s1464_s25 = sshll.u32 %s1665_s24, 3  ;;  %1098 = vmatpush1.msk.msra.mxu0 %vm508_vm0, %v490_v3  ;;  %v485_v8 = vld [vmem:[#allocation2 + $0x58] sm:$0xff]  ;;  %v484_v9 = vld [vmem:[#allocation2 + $0x50] sm:$0xff]  ;;  %v483_v10 = vld [vmem:[#allocation2 + $0x48] sm:$0xff]  ;;  %vm717_vm4 = vcmask 1041408   ;;  %v495_v49 = vshrl.u32 %v494_v48, 7 }
  0x3e   : > { %s461_s30 = scalar_lea.vmem %s1643_s1, %s1464_s25  ;;  %531 = vmatprep.subr.mxu0 %v489_v4  ;;  %v605_v11 = vld [vmem:[%s1646_s4 + $0x78] sm:$0xff]  ;;  %v482_v12 = vld [vmem:[#allocation2 + $0x40] sm:$0xff]  ;;  %v604_v13 = vld [vmem:[%s1646_s4 + $0x70] sm:$0xff]  ;;  %vm616_vm5 = vcmask 162816   ;;  %vm1326_vm6 = vmmov 0   ;;  %vm713_vm7 = vcmask 605184   ;;  %s465_s18 = scalar_lea.vmem %s1654_s12, %s1464_s25 }
  0x3f   : > { %v467_v1 = vld [vmem:[%s461_s30] sm:$0xff]  ;;  %532 = vmatpush1.msra.mxu0 %v488_v5  ;;  %625 = vmatpush1.msra.mxu1 %v605_v11  ;;  %v481_v14 = vld [vmem:[#allocation2 + $0x38] sm:$0xff]  ;;  %v603_v15 = vld [vmem:[%s1646_s4 + $0x68] sm:$0xff]  ;;  %s457_s30 = scalar_lea.vmem %s1642_s0, %s1464_s25  ;;  %v496_v50 = vsub.s32 0, %v495_v49  ;;  %v500_v52 = vsub.s32 1, %v495_v49  ;;  %s1327_s22 = smov 96  }
  0x40   : > { %469 = vrot.lane.b32.xlu0 %v467_v1, %s1325_s14  ;;  %533 = vmatprep.subr.mxu0 %v487_v6  ;;  %v480_v16 = vld [vmem:[#allocation2 + $0x30] sm:$0xff]  ;;  %v479_v17 = vld [vmem:[#allocation2 + $0x28] sm:$0xff]  ;;  %v602_v18 = vld [vmem:[%s1646_s4 + $0x60] sm:$0xff]  ;;  %vm801_vm8 = vcmask 261120   ;;  %vm895_vm9 = vcmask 171008   ;;  %vm974_vm10 = vcmask 39936  }
  0x41   : > { %534 = vmatpush1.msra.mxu0 %v486_v7  ;;  %626 = vmatprep.subr.mxu1 %v1324_v0  ;;  %v478_v19 = vld [vmem:[#allocation2 + $0x20] sm:$0xff]  ;;  %v477_v20 = vld [vmem:[#allocation2 + $0x18] sm:$0xff]  ;;  %v476_v22 = vld [vmem:[#allocation2 + $0x10] sm:$0xff] }
  0x42   : > { %535 = vmatprep.subr.mxu0 %v485_v8  ;;  %627 = vmatpush1.msra.mxu1 %v604_v13  ;;  %v601_v21 = vld [vmem:[%s1646_s4 + $0x58] sm:$0xff]  ;;  %v475_v23 = vld [vmem:[#allocation2 + $0x8] sm:$0xff]  ;;  %v600_v24 = vld [vmem:[%s1646_s4 + $0x50] sm:$0xff] }
  0x43   : > { %536 = vmatpush1.msra.mxu0 %v484_v9  ;;  %628 = vmatprep.subr.mxu1 %v1324_v0  ;;  %v474_v25 = vld [vmem:[#allocation2] sm:$0xff]  ;;  %v599_v26 = vld [vmem:[%s1646_s4 + $0x48] sm:$0xff]  ;;  %v597_v28 = vld [vmem:[%s1646_s4 + $0x38] sm:$0xff] }
  0x44   : > { %537 = vmatprep.subr.mxu0 %v483_v10  ;;  %629 = vmatpush1.msra.mxu1 %v603_v15  ;;  %v598_v27 = vld [vmem:[%s1646_s4 + $0x40] sm:$0xff]  ;;  %v596_v29 = vld [vmem:[%s1646_s4 + $0x30] sm:$0xff]  ;;  %v595_v30 = vld [vmem:[%s1646_s4 + $0x28] sm:$0xff] }
  0x45   : > { %538 = vmatpush1.msra.mxu0 %v482_v12  ;;  %630 = vmatprep.subr.mxu1 %v1324_v0  ;;  %v594_v31 = vld [vmem:[%s1646_s4 + $0x20] sm:$0xff]  ;;  %v593_v32 = vld [vmem:[%s1646_s4 + $0x18] sm:$0xff]  ;;  %v592_v33 = vld [vmem:[%s1646_s4 + $0x10] sm:$0xff] }
  0x46   : > { %539 = vmatprep.subr.mxu0 %v481_v14  ;;  %631 = vmatpush1.msra.mxu1 %v602_v18  ;;  %v466_v34 = vld [vmem:[%s457_s30] sm:$0xff]  ;;  %v591_v37 = vld [vmem:[%s1646_s4 + $0x8] sm:$0xff]  ;;  %v608_v39 = vld [vmem:[%s1646_s4 + $0x90] sm:$0xf] }
  0x47   : > { %540 = vmatpush1.msra.mxu0 %v480_v16  ;;  %632 = vmatprep.subr.mxu1 %v1324_v0  ;;  %v590_v38 = vld [vmem:[%s1646_s4] sm:$0xff]  ;;  %v607_v40 = vld [vmem:[%s1646_s4 + $0x88] sm:$0xff]  ;;  %v703_v44 = vld [vmem:[%s1648_s6 + $0x38] sm:$0xff] }
  0x48   : > { %541 = vmatprep.subr.mxu0 %v479_v17  ;;  %633 = vmatpush1.msra.mxu1 %v601_v21  ;;  %v606_v41 = vld [vmem:[%s1646_s4 + $0x80] sm:$0xff]  ;;  %v705_v42 = vld [vmem:[%s1648_s6 + $0x48] sm:$0x3]  ;;  %v702_v45 = vld [vmem:[%s1648_s6 + $0x30] sm:$0xff] }
  0x49   : > { %542 = vmatpush1.msra.mxu0 %v478_v19  ;;  %634 = vmatprep.subr.mxu1 %v1324_v0  ;;  %v704_v43 = vld [vmem:[%s1648_s6 + $0x40] sm:$0xff]  ;;  %v701_v46 = vld [vmem:[%s1648_s6 + $0x28] sm:$0xff]  ;;  %v699_v63 = vld [vmem:[%s1648_s6 + $0x18] sm:$0xff] }
  0x4a   : > { %543 = vmatprep.subr.mxu0 %v477_v20  ;;  %635 = vmatpush1.msra.mxu1 %v600_v24  ;;  %v700_v47 = vld [vmem:[%s1648_s6 + $0x20] sm:$0xff]  ;;  %v698_v1 = vld [vmem:[%s1648_s6 + $0x10] sm:$0xff]  ;;  %v697_v2 = vld [vmem:[%s1648_s6 + $0x8] sm:$0xff] }
  0x4b   : > { %544 = vmatpush1.msra.mxu0 %v476_v22  ;;  %636 = vmatprep.subr.mxu1 %v1324_v0  ;;  %v492_v51 = vld [vmem:[%s1645_s3] sm:$0x3]  ;;  %v1100_v4 = vld [vmem:[#allocation4] ss:$0 sm:$0xff]  ;;  %v796_v10 = vld [vmem:[%s1650_s8 + $0x18] sm:$0xff] }
  0x4c   : > { %545 = vmatprep.subr.mxu0 %v475_v23  ;;  %637 = vmatpush1.msra.mxu1 %v599_v26  ;;  %v497_v53 = vrot.slane %v492_v51, %v496_v50  ;;  %v501_v54 = vrot.slane %v492_v51, %v500_v52  ;;  %v696_v3 = vld [vmem:[%s1648_s6] sm:$0xff]  ;;  %v795_v11 = vld [vmem:[%s1650_s8 + $0x10] sm:$0xff]  ;;  %v794_v12 = vld [vmem:[%s1650_s8 + $0x8] sm:$0xff] }
  0x4d   : > { %546 = vmatpush1.msra.mxu0 %v474_v25  ;;  %638 = vmatprep.subr.mxu1 %v1324_v0  ;;  %v793_v13 = vld [vmem:[%s1650_s8] sm:$0xff]  ;;  %v1103_v14 = vld [vmem:[#allocation6] ss:$0 sm:$0xff]  ;;  %v886_v21 = vld [vmem:[%s1652_s10 + $0x8] sm:$0xff] }
  0x4e   : > { %1133 = vmatprep.subr.mxu0 %v1324_v0  ;;  %639 = vmatpush1.msra.mxu1 %v598_v27  ;;  %v887_v20 = vld [vmem:[%s1652_s10 + $0x10] sm:$0x1f]  ;;  %v885_v22 = vld [vmem:[%s1652_s10] sm:$0xff] }
  0x4f   : > { %640 = vmatprep.subr.mxu1 %v1324_v0  ;;  %v1107_v25 = vld [vmem:[%s1651_s9] ss:$0 sm:$0xff] }
  0x50   : > { %641 = vmatpush1.msra.mxu1 %v597_v28 }
  0x51   : > { %642 = vmatprep.subr.mxu1 %v1324_v0 }
  0x52   : > { %643 = vmatpush1.msra.mxu1 %v596_v29 }
  0x53   : > { %644 = vmatprep.subr.mxu1 %v1324_v0 }
  0x54   : > { %645 = vmatpush1.msra.mxu1 %v595_v30 }
  0x55   : > { %646 = vmatprep.subr.mxu1 %v1324_v0 }
  0x56   : > { %647 = vmatpush1.msra.mxu1 %v594_v31 }
  0x57   : > { %648 = vmatprep.subr.mxu1 %v1324_v0 }
  0x58   : > { %649 = vmatpush1.msra.mxu1 %v593_v32 }
  0x59   : > { %650 = vmatprep.subr.mxu1 %v1324_v0 }
  0x5a   : > { %651 = vmatpush1.msra.mxu1 %v592_v33 }
  0x5b   : > { %652 = vmatprep.subr.mxu1 %v1324_v0 }
  0x5c   : > { %653 = vmatpush1.msra.mxu1 %v591_v37 }
  0x5d   : > { %654 = vmatprep.subr.mxu1 %v1324_v0 }
  0x5e   : > { %655 = vmatpush1.msra.mxu1 %v590_v38 }
  0x5f   : > { %682 = vmatprep.subr.mxu1 %v1324_v0 }
  0x60   : > { %1101 = vmatpush2.msk.msra.mxu1 %vm620_vm3, %v608_v39 }
  0x61   : > { %684 = vmatprep.subr.mxu1 %v1324_v0 }
  0x62   : > { %685 = vmatpush2.msra.mxu1 %v607_v40 }
  0x63   : > { %686 = vmatprep.subr.mxu1 %v1324_v0 }
  0x64   : > { %687 = vmatpush2.msra.mxu1 %v606_v41 }
  0x65   : > { %1167 = vmatprep.subr.mxu1 %v1324_v0 }
  0xb2   : > { %v470_v35 = vpop.permute.xlu0 %469 }
  0xb3   : > { %v473_v36 = vsel %vm472_vm1, %v466_v34, %v470_v35 }
  0xb4   : > { %1099 = vmatmul.mubr.msk.f32.vlgmr.msra.gmra.mxu0 %vm504_vm2, %v473_v36 }
  0xb5   : > { %1134 = vmatpush3.msk.msra.mxu0 %vm717_vm4, %v705_v42  ;;  %1153 = vmatprep.mubr.msk.f32.mxu0 %vm1326_vm6, %v1324_v0 }
  0xb6   : > { %1135 = vmatprep.subr.mxu0 %v1324_v0 }
  0xb7   : > { %1136 = vmatpush3.msra.mxu0 %v704_v43 }
  0xb8   : > { %1137 = vmatprep.subr.mxu0 %v1324_v0 }
  0xb9   : > { %1138 = vmatpush3.msra.mxu0 %v703_v44 }
  0xba   : > { %1139 = vmatprep.subr.mxu0 %v1324_v0 }
  0xbb   : > { %1140 = vmatpush3.msra.mxu0 %v702_v45 }
  0xbc   : > { %1141 = vmatprep.subr.mxu0 %v1324_v0 }
  0xbd   : > { %1142 = vmatpush3.msra.mxu0 %v701_v46 }
  0xbe   : > { %1143 = vmatprep.subr.mxu0 %v1324_v0 }
  0xbf   : > { %1144 = vmatpush3.msra.mxu0 %v700_v47 }
  0xc0   : > { %1145 = vmatprep.subr.mxu0 %v1324_v0 }
  0xc1   : > { %1146 = vmatpush3.msra.mxu0 %v699_v63 }
  0xc2   : > { %1147 = vmatprep.subr.mxu0 %v1324_v0 }
  0xc3   : > { %1148 = vmatpush3.msra.mxu0 %v698_v1 }
  0xc4   : > { %1149 = vmatprep.subr.mxu0 %v1324_v0 }
  0xc5   : > { %1150 = vmatpush3.msra.mxu0 %v697_v2 }
  0xc6   : > { %1151 = vmatprep.subr.mxu0 %v1324_v0 }
  0xc7   : > { %1152 = vmatpush3.msra.mxu0 %v696_v3 }
  0xc8   : > { %1156 = vmatprep.subr.mxu0 %v1324_v0 }
 0x174   : > { %v581_v55 = vpop.f32.mrf.mxu0 }
 0x175   : > { %v582_v56 = vadd.f32 %v581_v55, %v497_v53 }
 0x176   : > { %v583_v57 = vpop.f32.mrf.mxu0 }
 0x177   : > { %v584_v58 = vadd.f32 %v583_v57, %v501_v54  ;;  %v586_v59 = vmul.f32 0.01, %v582_v56 }
 0x179   : > { %v587_v60 = vmul.f32 0.01, %v584_v58  ;;  %v588_v62 = vmax.f32 %v582_v56, %v586_v59 }
 0x17b   : > { %v589_v61 = vmax.f32 %v584_v58, %v587_v60 }
 0x17d   : > { %1102 = vmatprep.mubr.msk.f32.mxu1 %vm616_vm5, %v589_v61 }
 0x17e   : > { %689 = vmatmul.mubr.f32.vlgmr.msra.gmra.mxu1 %v588_v62 }
 0x17f   : > { %1173 = vmatprep.mubr.msk.f32.mxu1 %vm1326_vm6, %v1324_v0  ;;  %1168 = vmatpush3.msk.msra.mxu1 %vm508_vm0, %v887_v20 }
 0x180   : > { %1169 = vmatprep.subr.mxu1 %v1324_v0 }
 0x181   : > { %1170 = vmatpush3.msra.mxu1 %v886_v21 }
 0x182   : > { %1171 = vmatprep.subr.mxu1 %v1324_v0 }
 0x183   : > { %1172 = vmatpush3.msra.mxu1 %v885_v22 }
 0x23e   : > { %v690_v5 = vpop.f32.mrf.mxu1 }
 0x23f   : > { %v691_v6 = vadd.f32 %v1100_v4, %v690_v5 }
 0x240   : > { %v692_v7 = vpop.f32.mrf.mxu1 }
 0x241   : > { %v694_v8 = vmul.f32 0.01, %v691_v6 }
 0x243   : > { %v695_v9 = vmax.f32 %v691_v6, %v694_v8 }
 0x245   : > { %1154 = vmatmul.mubr.msk.f32.vlgmr.msra.gmra.mxu0 %vm713_vm7, %v695_v9 }
 0x246   : > { %1164 = vmatprep.mubr.msk.f32.mxu0 %vm1326_vm6, %v1324_v0  ;;  %1157 = vmatpush3.msra.mxu0 %v796_v10 }
 0x247   : > { %1158 = vmatprep.subr.mxu0 %v1324_v0 }
 0x248   : > { %1159 = vmatpush3.msra.mxu0 %v795_v11 }
 0x249   : > { %1160 = vmatprep.subr.mxu0 %v1324_v0 }
 0x24a   : > { %1161 = vmatpush3.msra.mxu0 %v794_v12 }
 0x24b   : > { %1162 = vmatprep.subr.mxu0 %v1324_v0  ;;  %v1108_v0 = vld [vmem:[%s1653_s11] ss:$0 sm:$0xff] }
 0x24c   : > { %1163 = vmatpush3.msra.mxu0 %v793_v13 }
 0x305   : > { %v787_v15 = vpop.f32.mrf.mxu0 }
 0x306   : > { %v788_v16 = vadd.f32 %v1103_v14, %v787_v15 }
 0x307   : > { %v1155_v17 = vpop.f32.mrf.mxu0 }
 0x308   : > { %v791_v18 = vmul.f32 0.01, %v788_v16  ;;  %798 = vrot.lane.b32.xlu0 %v788_v16, %s1327_s22 }
 0x30a   : > { %v792_v19 = vmax.f32 %v788_v16, %v791_v18 }
 0x30c   : > { %1165 = vmatmul.mubr.msk.f32.vlgmr.msra.gmra.mxu0 %vm801_vm8, %v792_v19 }
 0x37a   : > { %v799_v23 = vpop.permute.xlu0 %798 }
 0x3cc   : > { %v871_v24 = vpop.f32.mrf.mxu0 }
 0x3cd   : > { %v872_v26 = vadd.f32 %v871_v24, %v799_v23 }
 0x3ce   : > { %v1166_v27 = vpop.f32.mrf.mxu0 }
 0x3cf   : > { %v882_v28 = vadd.f32 %v1107_v25, %v872_v26 }
 0x3d1   : > { %v883_v29 = vmul.f32 0.01, %v882_v28 }
 0x3d3   : > { %v884_v30 = vmax.f32 %v882_v28, %v883_v29 }
 0x3d5   : > { %1174 = vmatmul.mubr.msk.f32.vlgmr.msra.gmra.mxu1 %vm895_vm9, %v884_v30 }
 0x495   : > { %v968_v31 = vpop.f32.mrf.mxu1 }
 0x496   : > { %v969_v32 = vadd.f32 %v1108_v0, %v968_v31 }
 0x497   : > { %v1175_v33 = vpop.f32.mrf.mxu1 }
 0x498   : > { %v972_v34 = vmul.f32 0.01, %v969_v32 }
 0x49a   : > { %v973_v35 = vmax.f32 %v969_v32, %v972_v34 }
 0x49c   : > { %v975_v36 = vsel %vm974_vm10, %v973_v35, -inf }
 0x49d   : > { %976 = vmax.xlane.f32.xlu1 %v975_v36 }
 0x526   : > { %v977_v37 = vpop.xlane.xlu1 %976 }
 0x527   : > { %v978_v38 = vsub.f32 %v973_v35, %v977_v37 }
 0x529   : > { %v979_v39 = vmul.f32 1.442695, %v978_v38 }
 0x52b   : > { %1221 = vpow2.f32 %v979_v39 }
 0x538   : > { %v1222_v40 = vpop.eup %1221 }
 0x539   : > { %v981_v41 = vsel %vm974_vm10, %v1222_v40, 0.0 }
 0x53a   : > { %982 = vadd.xlane.f32.xlu1 %v981_v41 }
 0x5c3   : > { %v983_v42 = vpop.xlane.xlu1 %982 }
 0x5c4   : > { %1223 = vrcp.f32 %v983_v42 }
 0x5d1   : > { %v1224_v43 = vpop.eup %1223 }
 0x5d2   : > { %v985_v44 = vmul.f32 %v1224_v43, %v1222_v40 }
 0x5d4   : > { %986 = vst.msk [vmem:[%s465_s18] sm:$0xff] %vm974_vm10, %v985_v44 }
 0x5d5 PF: > { %s24_s21 = sadd.s32 1, %s1317_s21  }
 0x5d6   : > { %p21_p5 = scmp.ge.s32.totalorder %s24_s21, 5  }
 0x5d8   :  { %23 = sbr.rel (!%p21_p5) target bundleno = 2 (0x2), region = 114 }
 0x5dd   :  { %1006 = vsyncpa [#allocation3], 1 }
 0x5de   :  { %1008 = vsyncpa [#allocation3 + $0x1], 1 }
 0x5df   :  { %1009 = vsyncpa [#allocation5], 1 }

</bundles_post_ra>
